<compile_context>
chip_gen: v5e
topology: v5e:2x2
jax: 0.10.0
libtpu: 0.0.40
codegen_flags: <defaults>
</compile_context>

<pallas_src>
import functools

import jax
import jax.numpy as jnp
from jax import lax
from jax.experimental import pallas as pl

_LANES = 128


def _dot_f32(a, b):
    return lax.dot_general(a, b, (((1,), (0,)), ((), ())),
                           preferred_element_type=jnp.float32)


# ----------------------------------------------------------------------------
# Parameter packing: everything into two VMEM slabs
# ----------------------------------------------------------------------------

def _pack_params(params):
    """Pack every parameter into two slabs:
         w_slab (bf16): matmul weight matrices stacked along rows,
                        left-aligned in 128 lanes (row offsets multiples of 16).
         b_slab (f32):  pos embedding, biases, LayerNorm params, one row each.
       Returns (w_slab, b_slab, w_index, b_index); each index maps
       name -> (row_offset, n_rows, n_cols) for static in-kernel slicing."""
    w_entries, b_entries = [], []

    def add_w(name, a): w_entries.append((name, jnp.asarray(a, jnp.float32)))
    def add_b(name, a): b_entries.append((name, jnp.asarray(a, jnp.float32)))

    tok = params["tokenizer"]
    m = params["model"]

    add_b("pos", tok["pos"])                       # first: 8-row aligned
    add_w("tok_proj_w", tok["proj"]["w"])
    add_b("tok_proj_b", tok["proj"]["b"])

    def add_ln(prefix, p):
        add_b(prefix + "_g", p["g"]); add_b(prefix + "_b", p["b"])

    def add_attn(prefix, p):
        add_w(prefix + "_wqkv", p["wqkv"]); add_b(prefix + "_bqkv", p["bqkv"])
        add_w(prefix + "_wo", p["wo"]); add_b(prefix + "_bo", p["bo"])

    def add_mlp(prefix, p):
        add_w(prefix + "_w1", p["w1"]); add_b(prefix + "_b1", p["b1"])
        add_w(prefix + "_w2", p["w2"]); add_b(prefix + "_b2", p["b2"])

    for i, lp in enumerate(m["enc_layers"]):
        add_ln(f"enc{i}_ln1", lp["ln1"]); add_attn(f"enc{i}_attn", lp["attn"])
        add_ln(f"enc{i}_ln2", lp["ln2"]); add_mlp(f"enc{i}_mlp", lp["mlp"])
    add_ln("enc_ln", m["enc_ln"])
    for i, lp in enumerate(m["dec_layers"]):
        add_ln(f"dec{i}_ln1", lp["ln1"]); add_attn(f"dec{i}_self", lp["self_attn"])
        add_ln(f"dec{i}_ln2", lp["ln2"]); add_attn(f"dec{i}_cross", lp["cross_attn"])
        add_ln(f"dec{i}_ln3", lp["ln3"]); add_mlp(f"dec{i}_mlp", lp["mlp"])
    add_ln("dec_ln", m["dec_ln"])

    # Head pre-padded to full 128-lane width -> lane-dense final store.
    hw = m["head"]["w"]; hb = m["head"]["b"]
    d_model = hw.shape[0]
    hw_pad = jnp.zeros((d_model, _LANES), jnp.float32).at[:, :hw.shape[1]].set(hw)
    hb_pad = jnp.zeros((1, _LANES), jnp.float32).at[:, :hb.shape[1]].set(hb)
    add_w("head_w", hw_pad)
    add_b("head_b", hb_pad)

    def build(entries, dtype, row_align):
        blocks, index, r = [], {}, 0
        for name, a in entries:
            nr, nc = a.shape
            nr_pad = -(-nr // row_align) * row_align
            blk = jnp.zeros((nr_pad, _LANES), jnp.float32).at[:nr, :nc].set(a)
            blocks.append(blk.astype(dtype))
            index[name] = (r, nr, nc)
            r += nr_pad
        return jnp.concatenate(blocks, axis=0), index

    w_slab, w_index = build(w_entries, jnp.bfloat16, 16)
    b_slab, b_index = build(b_entries, jnp.float32, 1)
    return w_slab, b_slab, w_index, b_index


# ----------------------------------------------------------------------------
# Fused whole-forward Pallas kernel
# ----------------------------------------------------------------------------

def _fused_forward_kernel(enc_ref, obs_ref, w_ref, b_ref, out_ref, *,
                          w_index, b_index, num_heads, enc_layers, dec_layers):
    d_model = enc_ref.shape[-1]
    dh = d_model // num_heads
    scale = 1.0 / float(dh) ** 0.5

    def W(name):
        r, nr, nc = w_index[name]
        return w_ref[r:r + nr, :nc]            # bf16 (nr, nc)

    def B(name):
        r, nr, nc = b_index[name]
        return b_ref[r:r + nr, :nc]            # f32 (nr, nc)

    def mxu(a, b):                             # a @ b : bf16 MXU, f32 accumulate
        return lax.dot_general(a.astype(jnp.bfloat16), b.astype(jnp.bfloat16),
                               (((1,), (0,)), ((), ())),
                               preferred_element_type=jnp.float32)

    def mxu_t(a, b):                           # a @ b.T (no explicit transpose)
        return lax.dot_general(a.astype(jnp.bfloat16), b.astype(jnp.bfloat16),
                               (((1,), (1,)), ((), ())),
                               preferred_element_type=jnp.float32)

    def layernorm(x, prefix):
        xf = x.astype(jnp.float32)
        mean = jnp.mean(xf, axis=-1, keepdims=True)
        msq = jnp.mean(xf * xf, axis=-1, keepdims=True)
        var = msq - mean * mean
        return ((xf - mean) * lax.rsqrt(var + 1e-5)
                * B(prefix + "_g") + B(prefix + "_b"))

    def mha(x_q, x_kv, prefix):
        wqkv = W(prefix + "_wqkv")
        bqkv = B(prefix + "_bqkv")
        if x_q is x_kv:                        # self-attention: one fused matmul
            qkv = mxu(x_q, wqkv) + bqkv
            q = qkv[:, :d_model]
            k = qkv[:, d_model:2 * d_model]
            v = qkv[:, 2 * d_model:]
        else:                                  # cross / last-token: split Q vs KV
            q = mxu(x_q, wqkv[:, :d_model]) + bqkv[:, :d_model]
            kv = mxu(x_kv, wqkv[:, d_model:]) + bqkv[:, d_model:]
            k = kv[:, :d_model]
            v = kv[:, d_model:]
        sq = q.shape[0]
        # Per-head score tiles stacked along sublanes -> ONE fused softmax.
        s = jnp.concatenate(
            [mxu_t(q[:, h * dh:(h + 1) * dh], k[:, h * dh:(h + 1) * dh])
             for h in range(num_heads)], axis=0) * scale          # (H*sq, Sk)
        m = jnp.max(s, axis=-1, keepdims=True)
        e = jnp.exp(s - m)
        p = e * pl.reciprocal(jnp.sum(e, axis=-1, keepdims=True), approx=True)
        # ONE P@V matmul against the full V, then block-diagonal head selection
        # (replaces the per-head PV matmuls + lane concatenate).
        pv = mxu(p, v)                                            # (H*sq, D)
        rh = lax.broadcasted_iota(jnp.int32, pv.shape, 0) // sq
        ch = lax.broadcasted_iota(jnp.int32, pv.shape, 1) // dh
        pv = jnp.where(rh == ch, pv, 0.0)
        o = pv[0:sq, :]
        for h in range(1, num_heads):
            o = o + pv[h * sq:(h + 1) * sq, :]                    # (sq, D)
        return mxu(o, W(prefix + "_wo")) + B(prefix + "_bo")

    def mlp(x, prefix):
        h = jnp.maximum(mxu(x, W(prefix + "_w1")) + B(prefix + "_b1"), 0.0)
        return mxu(h, W(prefix + "_w2")) + B(prefix + "_b2")

    # --- decoder-side tokenizer (proj + bias + positional, fused) -----------
    dec_x = mxu(obs_ref[...], W("tok_proj_w")) + B("tok_proj_b") + B("pos")

    # --- encoder stack (pre-LN) over the hand embedding ----------------------
    x = enc_ref[...].astype(jnp.float32)
    for i in range(enc_layers):
        h = layernorm(x, f"enc{i}_ln1")
        x = x + mha(h, h, f"enc{i}_attn")
        h = layernorm(x, f"enc{i}_ln2")
        x = x + mlp(h, f"enc{i}_mlp")
    enc_out = layernorm(x, "enc_ln")

    # --- decoder stack (self-attn + cross-attn + MLP, pre-LN) ----------------
    # TODO(synk): decoder self-attention is non-causal (same assumption as the
    # previous implementation of the reference RLformer).
    y = dec_x
    for i in range(dec_layers):
        if i < dec_layers - 1:
            h = layernorm(y, f"dec{i}_ln1")
            y = y + mha(h, h, f"dec{i}_self")
            h = layernorm(y, f"dec{i}_ln2")
            y = y + mha(h, enc_out, f"dec{i}_cross")
            h = layernorm(y, f"dec{i}_ln3")
            y = y + mlp(h, f"dec{i}_mlp")
        else:
            # Last decoder layer: only the final token feeds the head, so
            # restrict query-side work to the last row (self-attn K/V still
            # use every row).
            h = layernorm(y, f"dec{i}_ln1")
            sd = y.shape[0]
            y = y[sd - 1:sd, :] + mha(h[sd - 1:sd, :], h, f"dec{i}_self")
            h = layernorm(y, f"dec{i}_ln2")
            y = y + mha(h, enc_out, f"dec{i}_cross")
            h = layernorm(y, f"dec{i}_ln3")
            y = y + mlp(h, f"dec{i}_mlp")
    y = y if y.shape[0] == 1 else y[y.shape[0] - 1:, :]
    y = layernorm(y, "dec_ln")

    # --- fused policy + value head, lane-dense (1, 128) store ----------------
    out_ref[...] = (mxu(y, W("head_w")) + B("head_b")).astype(out_ref.dtype)


def _agent_forward(enc_input, obs_flat, w_slab, b_slab, *, w_index, b_index,
                   num_heads, enc_layers, dec_layers, action_dim,
                   seq_len, token_dim):
    obs_tokens = obs_flat.reshape(seq_len, token_dim)
    kernel = functools.partial(
        _fused_forward_kernel, w_index=w_index, b_index=b_index,
        num_heads=num_heads, enc_layers=enc_layers, dec_layers=dec_layers)
    out = pl.pallas_call(
        kernel,
        out_shape=jax.ShapeDtypeStruct((1, _LANES), jnp.float32),
        # No grid / no BlockSpecs: 4 full-array VMEM-resident operands
        # (~130 KiB total) -> one launch, a handful of DMAs.
    )(enc_input, obs_tokens, w_slab, b_slab)
    return out[0, :action_dim], out[0, action_dim]


# ----------------------------------------------------------------------------
# Tokenizer kernel (used once per player by init_player)
# ----------------------------------------------------------------------------

def _tokenizer_kernel(tokens_ref, w_ref, b_ref, pos_ref, o_ref):
    acc = _dot_f32(tokens_ref[...], w_ref[...])
    o_ref[...] = (acc + b_ref[...] + pos_ref[...]).astype(o_ref.dtype)


@jax.jit
def tokenizer_apply(flat, tok_params):
    pos = tok_params["pos"]
    w = tok_params["proj"]["w"]
    b = tok_params["proj"]["b"]
    seq_len, model_dim = pos.shape
    tokens = flat.reshape(seq_len, w.shape[0])
    return pl.pallas_call(
        _tokenizer_kernel,
        out_shape=jax.ShapeDtypeStruct((seq_len, model_dim), jnp.float32),
    )(tokens, w, b, pos)


# ----------------------------------------------------------------------------
# Parameter init (deterministic, in-script, f32 logical tree)
# ----------------------------------------------------------------------------

def _init_linear(key, din, dout):
    w = jax.random.normal(key, (din, dout), jnp.float32) * (1.0 / din ** 0.5)
    return {"w": w, "b": jnp.zeros((1, dout), jnp.float32)}


def _init_ln(dim):
    return {"g": jnp.ones((1, dim), jnp.float32),
            "b": jnp.zeros((1, dim), jnp.float32)}


def _init_attn(key, dim):
    kq, ko = jax.random.split(key)
    return {
        "wqkv": jax.random.normal(kq, (dim, 3 * dim), jnp.float32)
                * (1.0 / dim ** 0.5),
        "bqkv": jnp.zeros((1, 3 * dim), jnp.float32),
        "wo": jax.random.normal(ko, (dim, dim), jnp.float32)
              * (1.0 / dim ** 0.5),
        "bo": jnp.zeros((1, dim), jnp.float32),
    }


def _init_mlp(key, dim, mlp_dim):
    k1, k2 = jax.random.split(key)
    return {
        "w1": jax.random.normal(k1, (dim, mlp_dim), jnp.float32)
              * (1.0 / dim ** 0.5),
        "b1": jnp.zeros((1, mlp_dim), jnp.float32),
        "w2": jax.random.normal(k2, (mlp_dim, dim), jnp.float32)
              * (1.0 / mlp_dim ** 0.5),
        "b2": jnp.zeros((1, dim), jnp.float32),
    }


def _init_enc_layer(key, dim, mlp_dim):
    ka, km = jax.random.split(key)
    return {"ln1": _init_ln(dim), "attn": _init_attn(ka, dim),
            "ln2": _init_ln(dim), "mlp": _init_mlp(km, dim, mlp_dim)}


def _init_dec_layer(key, dim, mlp_dim):
    ks, kc, km = jax.random.split(key, 3)
    return {"ln1": _init_ln(dim), "self_attn": _init_attn(ks, dim),
            "ln2": _init_ln(dim), "cross_attn": _init_attn(kc, dim),
            "ln3": _init_ln(dim), "mlp": _init_mlp(km, dim, mlp_dim)}


def init_agent_params(key, *, model_dim, mlp_dim, sequence_length,
                      enc_layers, dec_layers, action_dim, token_dim):
    keys = jax.random.split(key, 4 + enc_layers + dec_layers)
    return {
        "tokenizer": {
            "proj": _init_linear(keys[0], token_dim, model_dim),
            "pos": 0.02 * jax.random.normal(
                keys[1], (sequence_length, model_dim), jnp.float32),
        },
        "model": {
            "enc_layers": [_init_enc_layer(keys[2 + i], model_dim, mlp_dim)
                           for i in range(enc_layers)],
            "enc_ln": _init_ln(model_dim),
            "dec_layers": [_init_dec_layer(keys[2 + enc_layers + i],
                                           model_dim, mlp_dim)
                           for i in range(dec_layers)],
            "dec_ln": _init_ln(model_dim),
            # policy head (action_dim cols) and value head (1 col) fused
            "head": _init_linear(keys[-1], model_dim, action_dim + 1),
        },
    }


# ----------------------------------------------------------------------------
# Agent (mirrors the PyTorch module's interface)
# ----------------------------------------------------------------------------

class Agent:
    def __init__(self, params, *, attn_heads, action_dim):
        self.params = params
        self.hand_dict = {}
        w_slab, b_slab, w_index, b_index = _pack_params(params)
        self.w_slab = w_slab
        self.b_slab = b_slab
        tok = params["tokenizer"]
        seq_len, _ = tok["pos"].shape
        token_dim = tok["proj"]["w"].shape[0]
        self._forward = jax.jit(functools.partial(
            _agent_forward, w_index=w_index, b_index=b_index,
            num_heads=attn_heads,
            enc_layers=len(params["model"]["enc_layers"]),
            dec_layers=len(params["model"]["dec_layers"]),
            action_dim=action_dim, seq_len=seq_len, token_dim=token_dim))

    def init_player(self, player, hand_flat):
        hand_tensor = tokenizer_apply(hand_flat, self.params["tokenizer"])
        assert hand_tensor is not None
        self.hand_dict[player] = hand_tensor

    def forward(self, player, obs_flat, new_hand):
        enc_input = self.hand_dict[player]
        # TODO(synk): `new_hand` gates the Transformer-XL recurrent memory
        # (memory_layers / mem_length) reset in the reference RLformer; that
        # recurrent memory has no provided reference implementation and is
        # omitted here.
        del new_hand
        return self._forward(enc_input, obs_flat, self.w_slab, self.b_slab)


# ----------------------------------------------------------------------------
# Main
# ----------------------------------------------------------------------------

if __name__ == "__main__":
    MODEL_DIM = 32
    MLP_DIM = 64
    ATTN_HEADS = 4
    SEQ_LEN = 8
    ENC_LAYERS = 1
    MEMORY_LAYERS = 1   # unused (recurrent memory omitted, see TODO above)
    MEM_LENGTH = 4      # unused
    DEC_LAYERS = 1
    ACTION_DIM = 6
    TOKEN_DIM = 16

    key = jax.random.PRNGKey(0)
    kp, kh, ko = jax.random.split(key, 3)

    params = init_agent_params(
        kp, model_dim=MODEL_DIM, mlp_dim=MLP_DIM, sequence_length=SEQ_LEN,
        enc_layers=ENC_LAYERS, dec_layers=DEC_LAYERS,
        action_dim=ACTION_DIM, token_dim=TOKEN_DIM)

    agent = Agent(params, attn_heads=ATTN_HEADS, action_dim=ACTION_DIM)

    hand_flat = jax.random.normal(kh, (SEQ_LEN * TOKEN_DIM,), jnp.float32)
    obs_flat = jax.random.normal(ko, (SEQ_LEN * TOKEN_DIM,), jnp.float32)

    agent.init_player("player_0", hand_flat)
    policy_logits, value = agent.forward("player_0", obs_flat, new_hand=False)

    jax.block_until_ready((policy_logits, value))
    assert policy_logits.shape == (ACTION_DIM,)
    assert value.shape == ()
    print("KERNEL_OK")
</pallas_src>

<mosaic_0001>
module attributes {stable_mosaic.version = 11 : i64} {
  func.func @_tokenizer_kernel(%arg0: memref<8x16xf32, #tpu.memory_space<vmem>>, %arg1: memref<16x32xf32, #tpu.memory_space<vmem>>, %arg2: memref<1x32xf32, #tpu.memory_space<vmem>>, %arg3: memref<8x32xf32, #tpu.memory_space<vmem>>, %arg4: memref<8x32xf32, #tpu.memory_space<vmem>>) attributes {dimension_semantics = [], scalar_prefetch = 0 : i64, scratch_operands = 0 : i64, tpu.core_type = #tpu.core_type<tc>} {
    %c0 = arith.constant 0 : index
    %c0_0 = arith.constant 0 : index
    %0 = vector.load %arg0[%c0, %c0_0] : memref<8x16xf32, #tpu.memory_space<vmem>>, vector<8x16xf32>
    %c0_1 = arith.constant 0 : index
    %c0_2 = arith.constant 0 : index
    %1 = vector.load %arg1[%c0_1, %c0_2] : memref<16x32xf32, #tpu.memory_space<vmem>>, vector<16x32xf32>
    %cst = arith.constant dense<0.000000e+00> : vector<8x32xf32>
    %2 = tpu.matmul %0, %1, %cst {dimension_numbers = #tpu.dot_dimension_numbers<[1], [0], [0], [1], [0, 0, 1, 1], [], []>} : vector<8x16xf32>, vector<16x32xf32>, vector<8x32xf32> -> vector<8x32xf32>
    %c0_3 = arith.constant 0 : index
    %c0_4 = arith.constant 0 : index
    %3 = vector.load %arg2[%c0_3, %c0_4] : memref<1x32xf32, #tpu.memory_space<vmem>>, vector<1x32xf32>
    %4 = vector.broadcast %3 : vector<1x32xf32> to vector<8x32xf32>
    %5 = arith.addf %2, %4 : vector<8x32xf32>
    %c0_5 = arith.constant 0 : index
    %c0_6 = arith.constant 0 : index
    %6 = vector.load %arg3[%c0_5, %c0_6] : memref<8x32xf32, #tpu.memory_space<vmem>>, vector<8x32xf32>
    %7 = arith.addf %5, %6 : vector<8x32xf32>
    %c0_7 = arith.constant 0 : index
    %c0_8 = arith.constant 0 : index
    %8 = vector.load %arg4[%c0_7, %c0_8] : memref<8x32xf32, #tpu.memory_space<vmem>>, vector<8x32xf32>
    tpu.vector_store %arg4[%c0_7, %c0_8], %7 {strides = array<i32>} : memref<8x32xf32, #tpu.memory_space<vmem>>, vector<8x32xf32>,
    return
  }
}

</mosaic_0001>

<bundles_post_ra>
// kernel: tokenizer_apply.1
= control target key start
LH: loop header
LB: loop body
LE: loop exit
PB: predicated region body
PF: predicated region fallthrough
CT: control target
= control target key end

     0   :  { %9 = vsyncpa [#allocation3], 0  ;;  %s188_s0 = inlined_call_operand.vmem [shape: f32[8,16], index: 0, kind: input, shape index: {}]   ;;  %s189_s1 = inlined_call_operand.hbm [shape: f32[16,32], index: 1, kind: input, shape index: {}]   ;;  %s190_s2 = inlined_call_operand.vmem [shape: f32[1,32], index: 2, kind: input, shape index: {}]   ;;  %s191_s3 = inlined_call_operand.vmem [shape: f32[8,32], index: 3, kind: input, shape index: {}]   ;;  %s192_s4 = inlined_call_operand.hbm [shape: f32[8,32], index: 4, kind: output, shape index: {}]  }
   0x1   :  { %10 = vsyncpa [#allocation4], 0  ;;  %s17_s17 = sshll.u32 %s189_s1, 4  ;;  %s144_s18 = smov [#allocation2]   ;;  %s18_s17 = int_to_ptr.hbm [resolvable:$true] %s17_s17 }
   0x2   :  { %s19_s19 = sshll.u32 %s144_s18, 4  ;;  %s145_s20 = smov 128   ;;  %s20_s19 = int_to_ptr.vmem [resolvable:$true] %s19_s19 }
   0x3   :  { %s146_s21 = smov 8  }
   0x4   :  { %25 = dma.hbm_to_vmem [thread:$0]  %s18_s17, 256, %s20_s19, [#allocation3], %s145_s20, %s145_s20, %s146_s21  }
   0x5   :  { %140 = dma.done.wait [#allocation3], 256  }
   0x6   :  { %141 = vsyncadd [#allocation3], 4294967040  ;;  %v36_v0 = vld [vmem:[#allocation2 + $0x8] sm:$0xff]  ;;  %v35_v1 = vld [vmem:[#allocation2] sm:$0xff]  ;;  %vm41_vm0 = vcmask 130048   ;;  %s147_s27 = smov [#allocation5]  }
   0x7   :  { %59 = vmatpush.msra.mxu0 %v36_v0  ;;  %v34_v2 = vld [vmem:[%s188_s0] sm:$0xff]  ;;  %s74_s28 = sshll.u32 %s147_s27, 4  ;;  %s76_s5 = sshll.u32 %s192_s4, 4  ;;  %vm67_vm1 = vcmask 261120   ;;  %s75_s28 = int_to_ptr.vmem [resolvable:$true] %s74_s28  ;;  %s77_s5 = int_to_ptr.hbm [resolvable:$true] %s76_s5 }
   0x8   :  { %v91_v3 = vld [vmem:[%s190_s2] ss:$0 sm:$0xff] }
   0x9   :  { %60 = vmatpush.msra.mxu0 %v35_v1  ;;  %v65_v5 = vld [vmem:[%s191_s3] sm:$0xff] }
   0xa   :  { %86 = vmatmul.msk.f32.vlgmr.msra.gmra.mxu0 %vm41_vm0, %v34_v2 }
  0x87   :  { %v62_v4 = vpop.f32.mrf.mxu0 }
  0x88   :  { %v63_v6 = vadd.f32 %v91_v3, %v62_v4 }
  0x8a   :  { %v66_v7 = vadd.f32 %v65_v5, %v63_v6 }
  0x8c   :  { %68 = vst.msk [vmem:[#allocation5] sm:$0xff] %vm67_vm1, %v66_v7 }
  0x8d   :  { %79 = dma.vmem_to_hbm [thread:$0]  %s75_s28, 128, %s77_s5, [#allocation4]  }
  0x8e   :  { %142 = dma.done.wait [#allocation4], 128  }
  0x8f   :  { %143 = vsyncadd [#allocation4], 4294967168 }
  0x90   :  { %84 = vsyncpa [#allocation3], 1 }
  0x91   :  { %85 = vsyncpa [#allocation4], 1 }

</bundles_post_ra>
